<compile_context>
chip_gen: v5e
topology: v5e:2x2
jax: 0.10.0
libtpu: 0.0.40
codegen_flags: <defaults>
</compile_context>

<pallas_src>
import numpy as np
import jax
import jax.numpy as jnp
from jax.experimental import pallas as pl
from jax.experimental.pallas import tpu as pltpu


# ----------------------------------------------------------------------------
# Parameter setup: mirrors GaborConvFixed.__init__ / calculate_weights()
# (cv2.getGaborKernel re-implemented in numpy; deterministic, no files).
# ----------------------------------------------------------------------------
INPUT_DICT = {
    'ksize': (31, 31),
    'gammas': [0.5],
    'bs': np.linspace(1, 2.6, num=3).tolist(),
    'sigmas': [8],
    'thetas': np.linspace(0, np.pi, 4, endpoint=False).tolist(),
    'psis': [np.pi / 2, 3 * np.pi / 2],
}


def _calc_lambda(sigma, bandwidth):
    p = 2.0 ** bandwidth
    c = np.sqrt(np.log(2) / 2)
    return sigma * np.pi / c * (p - 1) / (p + 1)


def _get_gabor_kernel(ksize, sigma, theta, lambd, gamma, psi):
    """numpy replica of cv2.getGaborKernel(..., ktype=cv2.CV_64F)."""
    kw, kh = ksize                      # cv2.Size is (width, height)
    xmax, ymax = kw // 2, kh // 2
    sigma_x, sigma_y = sigma, sigma / gamma
    ex, ey = -0.5 / (sigma_x * sigma_x), -0.5 / (sigma_y * sigma_y)
    cscale = 2.0 * np.pi / lambd
    c, s = np.cos(theta), np.sin(theta)
    y = np.arange(-ymax, ymax + 1, dtype=np.float64)[:, None]
    x = np.arange(-xmax, xmax + 1, dtype=np.float64)[None, :]
    xr = x * c + y * s
    yr = -x * s + y * c
    v = np.exp(ex * xr * xr + ey * yr * yr) * np.cos(cscale * xr + psi)
    # cv2 stores the value computed at (x, y) into kernel[ymax - y, xmax - x]
    return v[::-1, ::-1]


def make_gabor_weights(out_channels, in_channels, input_dict):
    """Same semantics as calculate_weights(): every (i, j) filter is overwritten by
    each (sigma, theta, b, gamma, psi) combination, so the LAST combination wins
    for all filters."""
    gf = None
    for sigma in input_dict['sigmas']:
        for theta in input_dict['thetas']:
            for b in input_dict['bs']:
                lambd = _calc_lambda(sigma, b)
                for gamma in input_dict['gammas']:
                    for psi in input_dict['psis']:
                        gf = _get_gabor_kernel(input_dict['ksize'], sigma, theta,
                                               lambd, gamma, psi)
    kh, kw = gf.shape
    w = np.broadcast_to(gf, (out_channels, in_channels, kh, kw)).astype(np.float32)
    return jnp.asarray(w)               # (O, C, KH, KW), like nn.Conv2d.weight


# ----------------------------------------------------------------------------
# Cheap im2col: pure data movement (62 static slices), K axis leading so no
# materialized transpose of the big matrix is needed afterwards.
#   at[c*KH*KW + ky*KW + kx, n*OH*OW + oh*OW + ow] = x[n, c, ky+oh, kx+ow]
# ----------------------------------------------------------------------------
def _im2col_k_major(xb, KH, KW):
    N, C, H, W = xb.shape
    OH, OW = H - KH + 1, W - KW + 1
    xc = jnp.transpose(xb, (1, 0, 2, 3))                                  # (C, N, H, W) — tiny
    rows = jnp.stack([xc[:, :, ky:ky + OH, :] for ky in range(KH)], axis=1)   # (C, KH, N, OH, W)
    cols = jnp.stack([rows[..., kx:kx + OW] for kx in range(KW)], axis=2)     # (C, KH, KW, N, OH, OW)
    return cols.reshape(C * KH * KW, N * OH * OW)                         # (K, P), bitcast reshape


# ----------------------------------------------------------------------------
# Pallas TPU kernel: one un-tiled, VMEM-resident GEMM with a lane-dense output.
#   bt: (O, K) bf16, at: (K, P) bf16  ->  out: (O, P) f32   (P is the lane dim)
# ----------------------------------------------------------------------------
def _gemm_t_kernel(bt_ref, at_ref, o_ref):
    o_ref[...] = jnp.dot(bt_ref[...], at_ref[...],
                         preferred_element_type=jnp.float32)


def _pallas_gemm_t(bt, at):
    O, K = bt.shape
    K2, P = at.shape
    assert K == K2
    flops = 2 * O * K * P
    bytes_accessed = (bt.size * bt.dtype.itemsize
                      + at.size * at.dtype.itemsize
                      + O * P * 4)
    return pl.pallas_call(
        _gemm_t_kernel,
        out_shape=jax.ShapeDtypeStruct((O, P), jnp.float32),
        # No grid: whole operands are copied HBM->VMEM once; single MXU dot.
        in_specs=[pl.BlockSpec(memory_space=pltpu.MemorySpace.VMEM),
                  pl.BlockSpec(memory_space=pltpu.MemorySpace.VMEM)],
        out_specs=pl.BlockSpec(memory_space=pltpu.MemorySpace.VMEM),
        cost_estimate=pl.CostEstimate(flops=flops, transcendentals=0,
                                      bytes_accessed=bytes_accessed),
    )(bt, at)


# ----------------------------------------------------------------------------
# Forward pass (== GaborConvFixed.forward): fixed-weight VALID conv.
# bt_bf16 is the pre-baked bf16 (O, C*KH*KW) GEMM operand (weights are constant).
# ----------------------------------------------------------------------------
def gabor_conv_fixed_forward(x_nchw, bt_bf16, KH, KW):
    N, C, H, W = x_nchw.shape
    O, K = bt_bf16.shape
    assert K == C * KH * KW
    OH, OW = H - KH + 1, W - KW + 1      # stride=1, padding=0, dilation=1

    at = _im2col_k_major(x_nchw.astype(jnp.bfloat16), KH, KW)   # (K, P) lane-dense
    out = _pallas_gemm_t(bt_bf16, at)                           # (O, P) f32
    return out.reshape(O, N, OH, OW).transpose(1, 0, 2, 3)      # NCHW (tiny, ~12 KB)


def conv2d_valid_pallas(x_nchw, weight):
    """General stride-1 / VALID / bias-free conv2d (NCHW x OIHW) through the same
    im2col + Pallas GEMM path; used to validate the (c, ky, kx) im2col ordering
    with a random weight (the rank-1 Gabor weight cannot catch ordering bugs)."""
    O, C, KH, KW = weight.shape
    bt = weight.reshape(O, C * KH * KW).astype(jnp.bfloat16)
    return gabor_conv_fixed_forward(x_nchw, bt, KH, KW)


if __name__ == "__main__":
    key = jax.random.PRNGKey(0)
    kx_key, kw_key = jax.random.split(key)
    N, C_in, H, W = 2, 3, 38, 38
    # natural out_channels = len(thetas)*len(psis)*len(bs)*len(sigmas)*len(gammas) = 24
    C_out, KH, KW = 24, 31, 31

    x = jax.random.normal(kx_key, (N, C_in, H, W), dtype=jnp.float32)
    weight = make_gabor_weights(C_out, C_in, INPUT_DICT)        # (24, 3, 31, 31)

    # Pre-bake the bf16 (O, K) GEMM operand once, outside the jitted forward.
    bt_const = jnp.asarray(np.asarray(weight).reshape(C_out, C_in * KH * KW),
                           dtype=jnp.bfloat16)
    fwd = jax.jit(lambda xin: gabor_conv_fixed_forward(xin, bt_const, KH, KW))

    y = jax.block_until_ready(fwd(x))
    assert y.shape == (N, C_out, H - KH + 1, W - KW + 1)

    # Check 1: fixed Gabor weights vs f32 XLA conv (same semantics as nn.Conv2d).
    ref = jax.block_until_ready(jax.lax.conv_general_dilated(
        x, weight, window_strides=(1, 1), padding='VALID',
        dimension_numbers=('NCHW', 'OIHW', 'NCHW'),
        precision=jax.lax.Precision.HIGHEST))
    rel_err = float(jnp.max(jnp.abs(y - ref)) / (jnp.max(jnp.abs(ref)) + 1e-6))
    assert rel_err < 5e-2, f"gabor-weight relative error too large: {rel_err}"

    # Check 2: RANDOM weights — validates the im2col (c, ky, kx) ordering, which
    # the broadcast Gabor weight alone cannot distinguish.
    w_rand = jax.random.normal(kw_key, (C_out, C_in, KH, KW), dtype=jnp.float32)
    y_rand = jax.block_until_ready(jax.jit(conv2d_valid_pallas)(x, w_rand))
    ref_rand = jax.block_until_ready(jax.lax.conv_general_dilated(
        x, w_rand, window_strides=(1, 1), padding='VALID',
        dimension_numbers=('NCHW', 'OIHW', 'NCHW'),
        precision=jax.lax.Precision.HIGHEST))
    rel_err2 = float(jnp.max(jnp.abs(y_rand - ref_rand)) /
                     (jnp.max(jnp.abs(ref_rand)) + 1e-6))
    assert rel_err2 < 5e-2, f"random-weight relative error too large: {rel_err2}"

    print("KERNEL_OK")
</pallas_src>

<mosaic_0001>
module attributes {stable_mosaic.version = 11 : i64} {
  func.func @_gemm_t_kernel(%arg0: memref<24x2883xbf16, #tpu.memory_space<vmem>>, %arg1: memref<2883x128xbf16, #tpu.memory_space<vmem>>, %arg2: memref<24x128xf32, #tpu.memory_space<vmem>>) attributes {dimension_semantics = [], scalar_prefetch = 0 : i64, scratch_operands = 0 : i64, tpu.core_type = #tpu.core_type<tc>} {
    %c0 = arith.constant 0 : index
    %c0_0 = arith.constant 0 : index
    %0 = vector.load %arg0[%c0, %c0_0] : memref<24x2883xbf16, #tpu.memory_space<vmem>>, vector<24x2883xbf16>
    %c0_1 = arith.constant 0 : index
    %c0_2 = arith.constant 0 : index
    %1 = vector.load %arg1[%c0_1, %c0_2] : memref<2883x128xbf16, #tpu.memory_space<vmem>>, vector<2883x128xbf16>
    %cst = arith.constant dense<0.000000e+00> : vector<24x128xf32>
    %2 = tpu.matmul %0, %1, %cst {dimension_numbers = #tpu.dot_dimension_numbers<[1], [0], [0], [1], [0, 0, 1, 1], [], []>} : vector<24x2883xbf16>, vector<2883x128xbf16>, vector<24x128xf32> -> vector<24x128xf32>
    %c0_3 = arith.constant 0 : index
    %c0_4 = arith.constant 0 : index
    %3 = vector.load %arg2[%c0_3, %c0_4] : memref<24x128xf32, #tpu.memory_space<vmem>>, vector<24x128xf32>
    tpu.vector_store %arg2[%c0_3, %c0_4], %2 {strides = array<i32>} : memref<24x128xf32, #tpu.memory_space<vmem>>, vector<24x128xf32>,
    return
  }
}

</mosaic_0001>

<bundles_post_ra>
// kernel: _lambda_.1
= control target key start
LH: loop header
LB: loop body
LE: loop exit
PB: predicated region body
PF: predicated region fallthrough
CT: control target
= control target key end

     0   :  { %vm1694_vm0 = vcmask 1040384   ;;  %vm1695_vm1 = vcmask 1041408   ;;  %vm1687_vm2 = vcmask 547840   ;;  %s3892_s1 = inlined_call_operand.vmem [shape: bf16[2883,128], index: 1, kind: input, shape index: {}]   ;;  %s3893_s0 = inlined_call_operand.vmem [shape: bf16[24,2883], index: 0, kind: input, shape index: {}]   ;;  %s3894_s2 = inlined_call_operand.vmem [shape: f32[24,128], index: 2, kind: output, shape index: {}]  }
   0x1   :  { %v2966_v0 = vld [vmem:[%s3892_s1 + $0x38] sm:$0xff]  ;;  %v2965_v4 = vld [vmem:[%s3892_s1 + $0x30] sm:$0xff]  ;;  %v2964_v8 = vld [vmem:[%s3892_s1 + $0x28] sm:$0xff] }
   0x2   :  { %v2974_v1 = vld [vmem:[%s3892_s1 + $0x78] sm:$0xff]  ;;  %1701 = vmatpush.bf16.msra.mxu0 %v2966_v0  ;;  %v2973_v5 = vld [vmem:[%s3892_s1 + $0x70] sm:$0xff]  ;;  %v2972_v9 = vld [vmem:[%s3892_s1 + $0x68] sm:$0xff] }
   0x3   :  { %v2982_v2 = vld [vmem:[%s3892_s1 + $0xb8] sm:$0xff]  ;;  %1719 = vmatpush.bf16.msra.mxu1 %v2974_v1  ;;  %v2981_v6 = vld [vmem:[%s3892_s1 + $0xb0] sm:$0xff]  ;;  %v2980_v10 = vld [vmem:[%s3892_s1 + $0xa8] sm:$0xff] }
   0x4   :  { %v2990_v3 = vld [vmem:[%s3892_s1 + $0xf8] sm:$0xff]  ;;  %1737 = vmatpush.bf16.msra.mxu2 %v2982_v2  ;;  %v2989_v7 = vld [vmem:[%s3892_s1 + $0xf0] sm:$0xff]  ;;  %v2988_v11 = vld [vmem:[%s3892_s1 + $0xe8] sm:$0xff] }
   0x5   :  { %1755 = vmatpush.bf16.msra.mxu3 %v2990_v3  ;;  %v2963_v12 = vld [vmem:[%s3892_s1 + $0x20] sm:$0xff]  ;;  %v2962_v16 = vld [vmem:[%s3892_s1 + $0x18] sm:$0xff]  ;;  %v2961_v20 = vld [vmem:[%s3892_s1 + $0x10] sm:$0xff] }
   0x6   :  { %1702 = vmatpush.bf16.msra.mxu0 %v2965_v4  ;;  %v2971_v13 = vld [vmem:[%s3892_s1 + $0x60] sm:$0xff]  ;;  %v2970_v17 = vld [vmem:[%s3892_s1 + $0x58] sm:$0xff]  ;;  %v2969_v21 = vld [vmem:[%s3892_s1 + $0x50] sm:$0xff] }
   0x7   :  { %1720 = vmatpush.bf16.msra.mxu1 %v2973_v5  ;;  %v2979_v14 = vld [vmem:[%s3892_s1 + $0xa0] sm:$0xff]  ;;  %v2978_v18 = vld [vmem:[%s3892_s1 + $0x98] sm:$0xff]  ;;  %v2977_v22 = vld [vmem:[%s3892_s1 + $0x90] sm:$0xff] }
   0x8   :  { %1738 = vmatpush.bf16.msra.mxu2 %v2981_v6  ;;  %v2987_v15 = vld [vmem:[%s3892_s1 + $0xe0] sm:$0xff]  ;;  %v2986_v19 = vld [vmem:[%s3892_s1 + $0xd8] sm:$0xff]  ;;  %v2985_v23 = vld [vmem:[%s3892_s1 + $0xd0] sm:$0xff] }
   0x9   :  { %1756 = vmatpush.bf16.msra.mxu3 %v2989_v7  ;;  %v2960_v24 = vld [vmem:[%s3892_s1 + $0x8] sm:$0xff]  ;;  %v2959_v28 = vld [vmem:[%s3892_s1] sm:$0xff]  ;;  %v2947_v33 = vld [vmem:[%s3893_s0 + $0x58] sm:$0xf0] }
   0xa   :  { %1703 = vmatpush.bf16.msra.mxu0 %v2964_v8  ;;  %v2968_v25 = vld [vmem:[%s3892_s1 + $0x48] sm:$0xff]  ;;  %v2967_v29 = vld [vmem:[%s3892_s1 + $0x40] sm:$0xff]  ;;  %v3014_v40 = vld [vmem:[%s3892_s1 + $0x1b8] sm:$0xff] }
   0xb   :  { %1721 = vmatpush.bf16.msra.mxu1 %v2972_v9  ;;  %v2976_v26 = vld [vmem:[%s3892_s1 + $0x88] sm:$0xff]  ;;  %v2975_v30 = vld [vmem:[%s3892_s1 + $0x80] sm:$0xff]  ;;  %v2998_v41 = vld [vmem:[%s3892_s1 + $0x138] sm:$0xff] }
   0xc   :  { %1739 = vmatpush.bf16.msra.mxu2 %v2980_v10  ;;  %v2984_v27 = vld [vmem:[%s3892_s1 + $0xc8] sm:$0xff]  ;;  %v2983_v31 = vld [vmem:[%s3892_s1 + $0xc0] sm:$0xff]  ;;  %v3006_v46 = vld [vmem:[%s3892_s1 + $0x178] sm:$0xff] }
   0xd   :  { %1757 = vmatpush.bf16.msra.mxu3 %v2988_v11  ;;  %v2124_v32 = vld [vmem:[%s3893_s0] sm:$0xf]  ;;  %v2936_v34 = vld [vmem:[%s3893_s0 + $0x4] sm:$0xf]  ;;  %v2132_v36 = vld [vmem:[%s3893_s0 + $0x8] sm:$0xf] }
   0xe   :  { %1704 = vmatpush.bf16.msra.mxu0 %v2963_v12  ;;  %v2126_v35 = vld [vmem:[%s3893_s0 + $0x5c] sm:$0xf0]  ;;  %v2948_v37 = vld [vmem:[%s3893_s0 + $0x60] sm:$0xf0]  ;;  %v2937_v38 = vld [vmem:[%s3893_s0 + $0xc] sm:$0xf]  ;;  %v2125_v42 = vor.u32 %v2947_v33, %v2124_v32 }
   0xf   :  { %1722 = vmatpush.bf16.msra.mxu1 %v2971_v13  ;;  %v2134_v39 = vld [vmem:[%s3893_s0 + $0x64] sm:$0xf0]  ;;  %v2129_v43 = vor.u32 %v2936_v34, %v2126_v35  ;;  %v2133_v44 = vor.u32 %v2948_v37, %v2132_v36  ;;  %v3022_v47 = vld [vmem:[%s3892_s1 + $0x1f8] sm:$0xff]  ;;  %v3013_v48 = vld [vmem:[%s3892_s1 + $0x1b0] sm:$0xff] }
  0x10   :  { %1740 = vmatpush.bf16.msra.mxu2 %v2979_v14  ;;  %v2137_v45 = vor.u32 %v2937_v38, %v2134_v39  ;;  %v2997_v49 = vld [vmem:[%s3892_s1 + $0x130] sm:$0xff]  ;;  %v3012_v52 = vld [vmem:[%s3892_s1 + $0x1a8] sm:$0xff]  ;;  %v36_v54 = vld [vmem:[%s3893_s0 + $0xb8] sm:$0xff] }
  0x11   :  { %1758 = vmatpush.bf16.msra.mxu3 %v2987_v15  ;;  %v3005_v50 = vld [vmem:[%s3892_s1 + $0x170] sm:$0xff]  ;;  %v2996_v53 = vld [vmem:[%s3892_s1 + $0x128] sm:$0xff]  ;;  %v37_v57 = vld [vmem:[%s3893_s0 + $0xc0] sm:$0xff]  ;;  %v491_v60 = vunpack.c.l.b16 %v36_v54  ;;  %v492_v61 = vunpack.c.h.b16 %v36_v54 }
  0x12   :  { %1705 = vmatpush.bf16.msra.mxu0 %v2962_v16  ;;  %v3021_v51 = vld [vmem:[%s3892_s1 + $0x1f0] sm:$0xff]  ;;  %v3004_v55 = vld [vmem:[%s3892_s1 + $0x168] sm:$0xff]  ;;  %v3011_v58 = vld [vmem:[%s3892_s1 + $0x1a0] sm:$0xff]  ;;  %v493_v62 = vunpack.c.l.b16 %v37_v57  ;;  %v494_v63 = vunpack.c.h.b16 %v37_v57 }
  0x13   :  { %1723 = vmatpush.bf16.msra.mxu1 %v2970_v17  ;;  %v3020_v56 = vld [vmem:[%s3892_s1 + $0x1e8] sm:$0xff]  ;;  %v2995_v59 = vld [vmem:[%s3892_s1 + $0x120] sm:$0xff]  ;;  %v3010_v2 = vld [vmem:[%s3892_s1 + $0x198] sm:$0xff]  ;;  %v537_v4 = vpack.c.b16 %v491_v60, %v491_v60  ;;  %v538_v5 = vpack.c.b16 %v492_v61, %v492_v61 }
  0x14   :  { %1741 = vmatpush.bf16.msra.mxu2 %v2978_v18  ;;  %v3003_v0 = vld [vmem:[%s3892_s1 + $0x160] sm:$0xff]  ;;  %v2994_v3 = vld [vmem:[%s3892_s1 + $0x118] sm:$0xff]  ;;  %v539_v6 = vpack.c.b16 %v493_v62, %v493_v62  ;;  %v540_v7 = vpack.c.b16 %v494_v63, %v494_v63  ;;  %v3009_v10 = vld [vmem:[%s3892_s1 + $0x190] sm:$0xff] }
  0x15   :  { %1759 = vmatpush.bf16.msra.mxu3 %v2986_v19  ;;  %v3019_v1 = vld [vmem:[%s3892_s1 + $0x1e0] sm:$0xff]  ;;  %v3002_v8 = vld [vmem:[%s3892_s1 + $0x158] sm:$0xff]  ;;  %v2993_v11 = vld [vmem:[%s3892_s1 + $0x110] sm:$0xff] }
  0x16   :  { %1706 = vmatpush.bf16.msra.mxu0 %v2961_v20  ;;  %v3018_v9 = vld [vmem:[%s3892_s1 + $0x1d8] sm:$0xff]  ;;  %v3001_v12 = vld [vmem:[%s3892_s1 + $0x150] sm:$0xff]  ;;  %v3008_v14 = vld [vmem:[%s3892_s1 + $0x188] sm:$0xff] }
  0x17   :  { %1724 = vmatpush.bf16.msra.mxu1 %v2969_v21  ;;  %v3017_v13 = vld [vmem:[%s3892_s1 + $0x1d0] sm:$0xff]  ;;  %v2992_v15 = vld [vmem:[%s3892_s1 + $0x108] sm:$0xff]  ;;  %v3007_v18 = vld [vmem:[%s3892_s1 + $0x180] sm:$0xff] }
  0x18   :  { %1742 = vmatpush.bf16.msra.mxu2 %v2977_v22  ;;  %v3000_v16 = vld [vmem:[%s3892_s1 + $0x148] sm:$0xff]  ;;  %v2991_v19 = vld [vmem:[%s3892_s1 + $0x100] sm:$0xff]  ;;  %v2140_v22 = vld [vmem:[%s3893_s0 + $0x10] sm:$0xf] }
  0x19   :  { %1760 = vmatpush.bf16.msra.mxu3 %v2985_v23  ;;  %v3016_v17 = vld [vmem:[%s3892_s1 + $0x1c8] sm:$0xff]  ;;  %v2999_v20 = vld [vmem:[%s3892_s1 + $0x140] sm:$0xff]  ;;  %v3046_v23 = vld [vmem:[%s3892_s1 + $0x2b8] sm:$0xff] }
  0x1a   :  { %1707 = vmatpush.bf16.msra.mxu0 %v2960_v24  ;;  %v3015_v21 = vld [vmem:[%s3892_s1 + $0x1c0] sm:$0xff]  ;;  %v3030_v24 = vld [vmem:[%s3892_s1 + $0x238] sm:$0xff]  ;;  %v3045_v35 = vld [vmem:[%s3892_s1 + $0x2b0] sm:$0xff] }
  0x1b   :  { %1725 = vmatpush.bf16.msra.mxu1 %v2968_v25  ;;  %v2949_v25 = vld [vmem:[%s3893_s0 + $0x68] sm:$0xf0]  ;;  %v3038_v32 = vld [vmem:[%s3892_s1 + $0x278] sm:$0xff]  ;;  %v3029_v39 = vld [vmem:[%s3892_s1 + $0x230] sm:$0xff] }
  0x1c   :  { %1743 = vmatpush.bf16.msra.mxu2 %v2976_v26  ;;  %v2938_v26 = vld [vmem:[%s3893_s0 + $0x14] sm:$0xf]  ;;  %v3054_v33 = vld [vmem:[%s3892_s1 + $0x2f8] sm:$0xff]  ;;  %v2141_v34 = vor.u32 %v2949_v25, %v2140_v22  ;;  %v2952_v22 = vld [vmem:[%s3893_s0 + $0x80] sm:$0xf0] }
  0x1d   :  { %1761 = vmatpush.bf16.msra.mxu3 %v2984_v27  ;;  %v2142_v27 = vld [vmem:[%s3893_s0 + $0x6c] sm:$0xf0]  ;;  %v3026_v57 = vld [vmem:[%s3892_s1 + $0x218] sm:$0xff] }
  0x1e   :  { %1708 = vmatpush.bf16.msra.mxu0 %v2959_v28  ;;  %v2148_v28 = vld [vmem:[%s3893_s0 + $0x18] sm:$0xf]  ;;  %v2145_v36 = vor.u32 %v2938_v26, %v2142_v27  ;;  %v3041_v61 = vld [vmem:[%s3892_s1 + $0x290] sm:$0xff] }
  0x1f   :  { %1726 = vmatpush.bf16.msra.mxu1 %v2967_v29  ;;  %v2950_v29 = vld [vmem:[%s3893_s0 + $0x70] sm:$0xf0] }
  0x20   :  { %1744 = vmatpush.bf16.msra.mxu2 %v2975_v30  ;;  %v2939_v30 = vld [vmem:[%s3893_s0 + $0x1c] sm:$0xf]  ;;  %v2149_v37 = vor.u32 %v2950_v29, %v2148_v28  ;;  %v3069_v26 = vld [vmem:[%s3892_s1 + $0x370] sm:$0xff] }
  0x21   :  { %1762 = vmatpush.bf16.msra.mxu3 %v2983_v31  ;;  %1709 = vmatmul.bf16.vlgmr.msra.gmra.mxu0 %v2125_v42  ;;  %v2150_v31 = vld [vmem:[%s3893_s0 + $0x74] sm:$0xf0]  ;;  %v3044_v42 = vld [vmem:[%s3892_s1 + $0x2a8] sm:$0xff] }
  0x22   :  { %1773 = vmatpush.bf16.msrb.mxu0 %v2998_v41  ;;  %1727 = vmatmul.bf16.vlgmr.msra.gmra.mxu1 %v2129_v43  ;;  %v2153_v38 = vor.u32 %v2939_v30, %v2150_v31  ;;  %v3053_v41 = vld [vmem:[%s3892_s1 + $0x2f0] sm:$0xff]  ;;  %v3028_v43 = vld [vmem:[%s3892_s1 + $0x228] sm:$0xff] }
  0x23   :  { %1745 = vmatmul.bf16.vlgmr.msra.gmra.mxu2 %v2133_v44  ;;  %1791 = vmatpush.bf16.msrb.mxu1 %v3006_v46  ;;  %v3036_v44 = vld [vmem:[%s3892_s1 + $0x268] sm:$0xff]  ;;  %v3043_v46 = vld [vmem:[%s3892_s1 + $0x2a0] sm:$0xff]  ;;  %v3061_v30 = vld [vmem:[%s3892_s1 + $0x330] sm:$0xff] }
  0x24   :  { %1809 = vmatpush.bf16.msrb.mxu2 %v3014_v40  ;;  %1763 = vmatmul.bf16.vlgmr.msra.gmra.mxu3 %v2137_v45  ;;  %v3037_v40 = vld [vmem:[%s3892_s1 + $0x270] sm:$0xff]  ;;  %v3052_v45 = vld [vmem:[%s3892_s1 + $0x2e8] sm:$0xff] }
  0x25   :  { %1827 = vmatpush.bf16.msrb.mxu3 %v3022_v47  ;;  %v38_v47 = vld [vmem:[%s3893_s0 + $0xc8] sm:$0xff]  ;;  %v3085_v31 = vld [vmem:[%s3892_s1 + $0x3f0] sm:$0xff] }
  0x26   :  { %1774 = vmatpush.bf16.msrb.mxu0 %v2997_v49  ;;  %v39_v49 = vld [vmem:[%s3893_s0 + $0xd0] sm:$0xff]  ;;  %v496_v54 = vunpack.c.h.b16 %v38_v47 }
  0x27   :  { %1792 = vmatpush.bf16.msrb.mxu1 %v3005_v50  ;;  %v3035_v50 = vld [vmem:[%s3892_s1 + $0x260] sm:$0xff] }
  0x28   :  { %1810 = vmatpush.bf16.msrb.mxu2 %v3013_v48  ;;  %v3027_v48 = vld [vmem:[%s3892_s1 + $0x220] sm:$0xff]  ;;  %v542_v62 = vpack.c.b16 %v496_v54, %v496_v54 }
  0x29   :  { %1828 = vmatpush.bf16.msrb.mxu3 %v3021_v51  ;;  %v3051_v51 = vld [vmem:[%s3892_s1 + $0x2e0] sm:$0xff] }
  0x2a   :  { %1775 = vmatpush.bf16.msrb.mxu0 %v2996_v53  ;;  %v3042_v53 = vld [vmem:[%s3892_s1 + $0x298] sm:$0xff] }
  0x2b   :  { %1793 = vmatpush.bf16.msrb.mxu1 %v3004_v55  ;;  %v497_v55 = vunpack.c.l.b16 %v39_v49 }
  0x2c   :  { %1811 = vmatpush.bf16.msrb.mxu2 %v3012_v52  ;;  %v495_v52 = vunpack.c.l.b16 %v38_v47 }
  0x2d   :  { %1829 = vmatpush.bf16.msrb.mxu3 %v3020_v56  ;;  %v498_v56 = vunpack.c.h.b16 %v39_v49  ;;  %v543_v63 = vpack.c.b16 %v497_v55, %v497_v55  ;;  %v3082_v49 = vld [vmem:[%s3892_s1 + $0x3d8] sm:$0xff] }
  0x2e   :  { %1776 = vmatpush.bf16.msrb.mxu0 %v2995_v59  ;;  %v3050_v59 = vld [vmem:[%s3892_s1 + $0x2d8] sm:$0xff]  ;;  %v541_v60 = vpack.c.b16 %v495_v52, %v495_v52  ;;  %v3065_v52 = vld [vmem:[%s3892_s1 + $0x350] sm:$0xff] }
  0x2f   :  { %1794 = vmatpush.bf16.msrb.mxu1 %v3003_v0  ;;  %v544_v0 = vpack.c.b16 %v498_v56, %v498_v56  ;;  %v3057_v56 = vld [vmem:[%s3892_s1 + $0x310] sm:$0xff] }
  0x30   :  { %1812 = vmatpush.bf16.msrb.mxu2 %v3011_v58  ;;  %v3034_v58 = vld [vmem:[%s3892_s1 + $0x258] sm:$0xff] }
  0x31   :  { %1830 = vmatpush.bf16.msrb.mxu3 %v3019_v1  ;;  %1714 = vmatmul.bf16.gmra.mxu0 %v537_v4  ;;  %v3025_v1 = vld [vmem:[%s3892_s1 + $0x210] sm:$0xff]  ;;  %v3040_v4 = vld [vmem:[%s3892_s1 + $0x288] sm:$0xff] }
  0x32   :  { %1777 = vmatpush.bf16.msrb.mxu0 %v2994_v3  ;;  %1732 = vmatmul.bf16.gmra.mxu1 %v538_v5  ;;  %v3049_v3 = vld [vmem:[%s3892_s1 + $0x2d0] sm:$0xff]  ;;  %v3024_v5 = vld [vmem:[%s3892_s1 + $0x208] sm:$0xff] }
  0x33   :  { %1750 = vmatmul.bf16.gmra.mxu2 %v539_v6  ;;  %1795 = vmatpush.bf16.msrb.mxu1 %v3002_v8  ;;  %v3032_v6 = vld [vmem:[%s3892_s1 + $0x248] sm:$0xff]  ;;  %v3039_v8 = vld [vmem:[%s3892_s1 + $0x280] sm:$0xff] }
  0x34   :  { %1813 = vmatpush.bf16.msrb.mxu2 %v3010_v2  ;;  %1768 = vmatmul.bf16.gmra.mxu3 %v540_v7  ;;  %v3033_v2 = vld [vmem:[%s3892_s1 + $0x250] sm:$0xff]  ;;  %v3048_v7 = vld [vmem:[%s3892_s1 + $0x2c8] sm:$0xff] }
  0x35   :  { %1831 = vmatpush.bf16.msrb.mxu3 %v3018_v9  ;;  %v3078_v9 = vld [vmem:[%s3892_s1 + $0x3b8] sm:$0xff] }
  0x36   :  { %1778 = vmatpush.bf16.msrb.mxu0 %v2993_v11  ;;  %v3031_v11 = vld [vmem:[%s3892_s1 + $0x240] sm:$0xff] }
  0x37   :  { %1796 = vmatpush.bf16.msrb.mxu1 %v3001_v12  ;;  %v3047_v12 = vld [vmem:[%s3892_s1 + $0x2c0] sm:$0xff] }
  0x38   :  { %1814 = vmatpush.bf16.msrb.mxu2 %v3009_v10  ;;  %v3023_v10 = vld [vmem:[%s3892_s1 + $0x200] sm:$0xff] }
  0x39   :  { %1832 = vmatpush.bf16.msrb.mxu3 %v3017_v13  ;;  %v2156_v13 = vld [vmem:[%s3893_s0 + $0x20] sm:$0xf] }
  0x3a   :  { %1779 = vmatpush.bf16.msrb.mxu0 %v2992_v15  ;;  %v3062_v15 = vld [vmem:[%s3892_s1 + $0x338] sm:$0xff] }
  0x3b   :  { %1797 = vmatpush.bf16.msrb.mxu1 %v3000_v16  ;;  %v3070_v16 = vld [vmem:[%s3892_s1 + $0x378] sm:$0xff] }
  0x3c   :  { %1815 = vmatpush.bf16.msrb.mxu2 %v3008_v14  ;;  %v2951_v14 = vld [vmem:[%s3893_s0 + $0x78] sm:$0xf0] }
  0x3d   :  { %1833 = vmatpush.bf16.msrb.mxu3 %v3016_v17  ;;  %v2940_v17 = vld [vmem:[%s3893_s0 + $0x24] sm:$0xf]  ;;  %v2157_v25 = vor.u32 %v2951_v14, %v2156_v13  ;;  %v2954_v13 = vld [vmem:[%s3893_s0 + $0x90] sm:$0xf0]  ;;  %v2943_v14 = vld [vmem:[%s3893_s0 + $0x3c] sm:$0xf] }
  0x3e   :  { %1780 = vmatpush.bf16.msrb.mxu0 %v2991_v19  ;;  %v3077_v19 = vld [vmem:[%s3892_s1 + $0x3b0] sm:$0xff] }
  0x3f   :  { %1798 = vmatpush.bf16.msrb.mxu1 %v2999_v20  ;;  %v2158_v20 = vld [vmem:[%s3893_s0 + $0x7c] sm:$0xf0] }
  0x40   :  { %1816 = vmatpush.bf16.msrb.mxu2 %v3007_v18  ;;  %v3086_v18 = vld [vmem:[%s3892_s1 + $0x3f8] sm:$0xff]  ;;  %v2161_v27 = vor.u32 %v2940_v17, %v2158_v20 }
  0x41   :  { %1834 = vmatpush.bf16.msrb.mxu3 %v3015_v21  ;;  %1781 = vmatmul.bf16.vlgmr.msrb.gmra.mxu0 %v2141_v34  ;;  %v2164_v21 = vld [vmem:[%s3893_s0 + $0x28] sm:$0xf] }
  0x42   :  { %1845 = vmatpush.bf16.msra.mxu0 %v3030_v24  ;;  %1799 = vmatmul.bf16.vlgmr.msrb.gmra.mxu1 %v2145_v36  ;;  %v2166_v24 = vld [vmem:[%s3893_s0 + $0x84] sm:$0xf0]  ;;  %v2165_v28 = vor.u32 %v2952_v22, %v2164_v21  ;;  %v3075_v36 = vld [vmem:[%s3892_s1 + $0x3a0] sm:$0xff] }
  0x43   :  { %1863 = vmatpush.bf16.msra.mxu1 %v3038_v32  ;;  %1817 = vmatmul.bf16.vlgmr.msrb.gmra.mxu2 %v2149_v37  ;;  %v3076_v32 = vld [vmem:[%s3892_s1 + $0x3a8] sm:$0xff]  ;;  %v3067_v37 = vld [vmem:[%s3892_s1 + $0x360] sm:$0xff] }
  0x44   :  { %1881 = vmatpush.bf16.msra.mxu2 %v3046_v23  ;;  %1835 = vmatmul.bf16.vlgmr.msrb.gmra.mxu3 %v2153_v38  ;;  %v2941_v23 = vld [vmem:[%s3893_s0 + $0x2c] sm:$0xf]  ;;  %v40_v38 = vld [vmem:[%s3893_s0 + $0xd8] sm:$0xff] }
  0x45   :  { %1899 = vmatpush.bf16.msra.mxu3 %v3054_v33  ;;  %v2169_v29 = vor.u32 %v2941_v23, %v2166_v24  ;;  %v3068_v33 = vld [vmem:[%s3892_s1 + $0x368] sm:$0xff] }
  0x46   :  { %1846 = vmatpush.bf16.msra.mxu0 %v3029_v39  ;;  %v3060_v34 = vld [vmem:[%s3892_s1 + $0x328] sm:$0xff]  ;;  %v3059_v39 = vld [vmem:[%s3892_s1 + $0x320] sm:$0xff] }
  0x47   :  { %1864 = vmatpush.bf16.msra.mxu1 %v3037_v40  ;;  %v41_v40 = vld [vmem:[%s3893_s0 + $0xe0] sm:$0xff]  ;;  %v3108_v22 = vld [vmem:[%s3892_s1 + $0x4a8] sm:$0xff] }
  0x48   :  { %1882 = vmatpush.bf16.msra.mxu2 %v3045_v35  ;;  %v3084_v35 = vld [vmem:[%s3892_s1 + $0x3e8] sm:$0xff]  ;;  %v502_v47 = vunpack.c.h.b16 %v41_v40 }
  0x49   :  { %1900 = vmatpush.bf16.msra.mxu3 %v3053_v41  ;;  %v3083_v41 = vld [vmem:[%s3892_s1 + $0x3e0] sm:$0xff]  ;;  %v3092_v23 = vld [vmem:[%s3892_s1 + $0x428] sm:$0xff] }
  0x4a   :  { %1847 = vmatpush.bf16.msra.mxu0 %v3028_v43  ;;  %v499_v43 = vunpack.c.l.b16 %v40_v38  ;;  %v548_v55 = vpack.c.b16 %v502_v47, %v502_v47  ;;  %v3100_v24 = vld [vmem:[%s3892_s1 + $0x468] sm:$0xff] }
  0x4b   :  { %1865 = vmatpush.bf16.msra.mxu1 %v3036_v44  ;;  %v3066_v44 = vld [vmem:[%s3892_s1 + $0x358] sm:$0xff] }
  0x4c   :  { %1883 = vmatpush.bf16.msra.mxu2 %v3044_v42  ;;  %v3074_v42 = vld [vmem:[%s3892_s1 + $0x398] sm:$0xff] }
  0x4d   :  { %1901 = vmatpush.bf16.msra.mxu3 %v3052_v45  ;;  %v500_v45 = vunpack.c.h.b16 %v40_v38 }
  0x4e   :  { %1848 = vmatpush.bf16.msra.mxu0 %v3027_v48  ;;  %v3058_v48 = vld [vmem:[%s3892_s1 + $0x318] sm:$0xff] }
  0x4f   :  { %1866 = vmatpush.bf16.msra.mxu1 %v3035_v50  ;;  %v3073_v50 = vld [vmem:[%s3892_s1 + $0x390] sm:$0xff] }
  0x50   :  { %1884 = vmatpush.bf16.msra.mxu2 %v3043_v46  ;;  %v501_v46 = vunpack.c.l.b16 %v41_v40 }
  0x51   :  { %1902 = vmatpush.bf16.msra.mxu3 %v3051_v51  ;;  %1786 = vmatmul.bf16.gmra.mxu0 %v541_v60  ;;  %v545_v51 = vpack.c.b16 %v499_v43, %v499_v43  ;;  %v3056_v60 = vld [vmem:[%s3892_s1 + $0x308] sm:$0xff]  ;;  %v3097_v43 = vld [vmem:[%s3892_s1 + $0x450] sm:$0xff] }
  0x52   :  { %1849 = vmatpush.bf16.msra.mxu0 %v3026_v57  ;;  %1804 = vmatmul.bf16.gmra.mxu1 %v542_v62  ;;  %v547_v54 = vpack.c.b16 %v501_v46, %v501_v46  ;;  %v3081_v57 = vld [vmem:[%s3892_s1 + $0x3d0] sm:$0xff]  ;;  %v3071_v62 = vld [vmem:[%s3892_s1 + $0x380] sm:$0xff] }
  0x53   :  { %1867 = vmatpush.bf16.msra.mxu1 %v3034_v58  ;;  %1822 = vmatmul.bf16.gmra.mxu2 %v543_v63  ;;  %v3072_v58 = vld [vmem:[%s3892_s1 + $0x388] sm:$0xff]  ;;  %v3063_v63 = vld [vmem:[%s3892_s1 + $0x340] sm:$0xff] }
  0x54   :  { %1885 = vmatpush.bf16.msra.mxu2 %v3042_v53  ;;  %1840 = vmatmul.bf16.gmra.mxu3 %v544_v0  ;;  %v546_v53 = vpack.c.b16 %v500_v45, %v500_v45  ;;  %v3110_v0 = vld [vmem:[%s3892_s1 + $0x4b8] sm:$0xff]  ;;  %v3113_v45 = vld [vmem:[%s3892_s1 + $0x4d0] sm:$0xff] }
  0x55   :  { %1903 = vmatpush.bf16.msra.mxu3 %v3050_v59  ;;  %v3064_v59 = vld [vmem:[%s3892_s1 + $0x348] sm:$0xff] }
  0x56   :  { %1850 = vmatpush.bf16.msra.mxu0 %v3025_v1  ;;  %v3102_v1 = vld [vmem:[%s3892_s1 + $0x478] sm:$0xff] }
  0x57   :  { %1868 = vmatpush.bf16.msra.mxu1 %v3033_v2  ;;  %v3055_v2 = vld [vmem:[%s3892_s1 + $0x300] sm:$0xff] }
  0x58   :  { %1886 = vmatpush.bf16.msra.mxu2 %v3041_v61  ;;  %v3080_v61 = vld [vmem:[%s3892_s1 + $0x3c8] sm:$0xff] }
  0x59   :  { %1904 = vmatpush.bf16.msra.mxu3 %v3049_v3  ;;  %v3079_v3 = vld [vmem:[%s3892_s1 + $0x3c0] sm:$0xff] }
  0x5a   :  { %1851 = vmatpush.bf16.msra.mxu0 %v3024_v5  ;;  %v2172_v5 = vld [vmem:[%s3893_s0 + $0x30] sm:$0xf] }
  0x5b   :  { %1869 = vmatpush.bf16.msra.mxu1 %v3032_v6  ;;  %v3118_v6 = vld [vmem:[%s3892_s1 + $0x4f8] sm:$0xff] }
  0x5c   :  { %1887 = vmatpush.bf16.msra.mxu2 %v3040_v4  ;;  %v3094_v4 = vld [vmem:[%s3892_s1 + $0x438] sm:$0xff] }
  0x5d   :  { %1905 = vmatpush.bf16.msra.mxu3 %v3048_v7  ;;  %v3109_v7 = vld [vmem:[%s3892_s1 + $0x4b0] sm:$0xff] }
  0x5e   :  { %1852 = vmatpush.bf16.msra.mxu0 %v3023_v10  ;;  %v3101_v10 = vld [vmem:[%s3892_s1 + $0x470] sm:$0xff] }
  0x5f   :  { %1870 = vmatpush.bf16.msra.mxu1 %v3031_v11  ;;  %v2174_v11 = vld [vmem:[%s3893_s0 + $0x8c] sm:$0xf0] }
  0x60   :  { %1888 = vmatpush.bf16.msra.mxu2 %v3039_v8  ;;  %v2953_v8 = vld [vmem:[%s3893_s0 + $0x88] sm:$0xf0] }
  0x61   :  { %1906 = vmatpush.bf16.msra.mxu3 %v3047_v12  ;;  %1853 = vmatmul.bf16.vlgmr.msra.gmra.mxu0 %v2157_v25  ;;  %v2180_v12 = vld [vmem:[%s3893_s0 + $0x38] sm:$0xf]  ;;  %v2173_v17 = vor.u32 %v2953_v8, %v2172_v5  ;;  %v3116_v25 = vld [vmem:[%s3892_s1 + $0x4e8] sm:$0xff]  ;;  %v2190_v5 = vld [vmem:[%s3893_s0 + $0x9c] sm:$0xf0] }
  0x62   :  { %1917 = vmatpush.bf16.msrb.mxu0 %v3062_v15  ;;  %1871 = vmatmul.bf16.vlgmr.msra.gmra.mxu1 %v2161_v27  ;;  %v2182_v15 = vld [vmem:[%s3893_s0 + $0x94] sm:$0xf0]  ;;  %v2181_v20 = vor.u32 %v2954_v13, %v2180_v12  ;;  %v3091_v27 = vld [vmem:[%s3892_s1 + $0x420] sm:$0xff]  ;;  %v3137_v13 = vld [vmem:[%s3892_s1 + $0x590] sm:$0xff] }
  0x63   :  { %1935 = vmatpush.bf16.msrb.mxu1 %v3070_v16  ;;  %1889 = vmatmul.bf16.vlgmr.msra.gmra.mxu2 %v2165_v28  ;;  %v3093_v16 = vld [vmem:[%s3892_s1 + $0x430] sm:$0xff]  ;;  %v2185_v21 = vor.u32 %v2943_v14, %v2182_v15  ;;  %v3099_v28 = vld [vmem:[%s3892_s1 + $0x460] sm:$0xff] }
  0x64   :  { %1953 = vmatpush.bf16.msrb.mxu2 %v3078_v9  ;;  %1907 = vmatmul.bf16.vlgmr.msra.gmra.mxu3 %v2169_v29  ;;  %v2942_v9 = vld [vmem:[%s3893_s0 + $0x34] sm:$0xf]  ;;  %v3115_v29 = vld [vmem:[%s3892_s1 + $0x4e0] sm:$0xff] }
  0x65   :  { %1971 = vmatpush.bf16.msrb.mxu3 %v3086_v18  ;;  %v3117_v18 = vld [vmem:[%s3892_s1 + $0x4f0] sm:$0xff]  ;;  %v2956_v8 = vld [vmem:[%s3893_s0 + $0xa0] sm:$0xf0] }
  0x66   :  { %1918 = vmatpush.bf16.msrb.mxu0 %v3061_v30  ;;  %v42_v30 = vld [vmem:[%s3893_s0 + $0xe8] sm:$0xff] }
  0x67   :  { %1936 = vmatpush.bf16.msrb.mxu1 %v3069_v26  ;;  %v3107_v26 = vld [vmem:[%s3892_s1 + $0x4a0] sm:$0xff] }
  0x68   :  { %1954 = vmatpush.bf16.msrb.mxu2 %v3077_v19  ;;  %v2177_v19 = vor.u32 %v2942_v9, %v2174_v11  ;;  %v3133_v9 = vld [vmem:[%s3892_s1 + $0x570] sm:$0xff]  ;;  %v2198_v11 = vld [vmem:[%s3893_s0 + $0xa4] sm:$0xf0] }
  0x69   :  { %1972 = vmatpush.bf16.msrb.mxu3 %v3085_v31  ;;  %v43_v31 = vld [vmem:[%s3893_s0 + $0xf0] sm:$0xff] }
  0x6a   :  { %1919 = vmatpush.bf16.msrb.mxu0 %v3060_v34  ;;  %v3098_v34 = vld [vmem:[%s3892_s1 + $0x458] sm:$0xff]  ;;  %v505_v38 = vunpack.c.l.b16 %v43_v31  ;;  %v506_v40 = vunpack.c.h.b16 %v43_v31 }
  0x6b   :  { %1937 = vmatpush.bf16.msrb.mxu1 %v3068_v33  ;;  %v3090_v33 = vld [vmem:[%s3892_s1 + $0x418] sm:$0xff] }
  0x6c   :  { %1955 = vmatpush.bf16.msrb.mxu2 %v3076_v32  ;;  %v3106_v32 = vld [vmem:[%s3892_s1 + $0x498] sm:$0xff] }
  0x6d   :  { %1973 = vmatpush.bf16.msrb.mxu3 %v3084_v35  ;;  %v503_v35 = vunpack.c.l.b16 %v42_v30  ;;  %v44_v31 = vld [vmem:[%s3893_s0 + $0xf8] sm:$0xff] }
  0x6e   :  { %1920 = vmatpush.bf16.msrb.mxu0 %v3059_v39  ;;  %v408_v39 = vld [vmem:[%s3892_s1 + $0x5a0] sm:$0x3] }
  0x6f   :  { %1938 = vmatpush.bf16.msrb.mxu1 %v3067_v37  ;;  %v504_v37 = vunpack.c.h.b16 %v42_v30  ;;  %v1325_v46 = vunpack.c.l.b16 %v408_v39 }
  0x70   :  { %1956 = vmatpush.bf16.msrb.mxu2 %v3075_v36  ;;  %v3114_v36 = vld [vmem:[%s3892_s1 + $0x4d8] sm:$0xff] }
  0x71   :  { %1974 = vmatpush.bf16.msrb.mxu3 %v3083_v41  ;;  %1858 = vmatmul.bf16.gmra.mxu0 %v545_v51  ;;  %v3105_v41 = vld [vmem:[%s3892_s1 + $0x490] sm:$0xff]  ;;  %v550_v47 = vpack.c.b16 %v504_v37, %v504_v37  ;;  %v3148_v51 = vmov 65535   ;;  %v507_v37 = vunpack.c.l.b16 %v44_v31 }
  0x72   :  { %1921 = vmatpush.bf16.msrb.mxu0 %v3058_v48  ;;  %1876 = vmatmul.bf16.gmra.mxu1 %v546_v53  ;;  %v551_v48 = vpack.c.b16 %v505_v38, %v505_v38  ;;  %v3088_v53 = vld [vmem:[%s3892_s1 + $0x408] sm:$0xff]  ;;  %v508_v38 = vunpack.c.h.b16 %v44_v31 }
  0x73   :  { %1939 = vmatpush.bf16.msrb.mxu1 %v3066_v44  ;;  %1894 = vmatmul.bf16.gmra.mxu2 %v547_v54  ;;  %v549_v44 = vpack.c.b16 %v503_v35, %v503_v35  ;;  %v3096_v54 = vld [vmem:[%s3892_s1 + $0x448] sm:$0xff] }
  0x74   :  { %1957 = vmatpush.bf16.msrb.mxu2 %v3074_v42  ;;  %1912 = vmatmul.bf16.gmra.mxu3 %v548_v55  ;;  %v3089_v42 = vld [vmem:[%s3892_s1 + $0x410] sm:$0xff]  ;;  %v3112_v55 = vld [vmem:[%s3892_s1 + $0x4c8] sm:$0xff] }
  0x75   :  { %1975 = vmatpush.bf16.msrb.mxu3 %v3082_v49  ;;  %v552_v49 = vpack.c.b16 %v506_v40, %v506_v40 }
  0x76   :  { %1922 = vmatpush.bf16.msrb.mxu0 %v3057_v56  ;;  %v1506_v56 = vpack.c.b16 %v1325_v46, %v1325_v46 }
  0x77   :  { %1940 = vmatpush.bf16.msrb.mxu1 %v3065_v52  ;;  %v1696_v52 = vsel %vm1694_vm0, 4294967295, %v3148_v51 }
  0x78   :  { %1958 = vmatpush.bf16.msrb.mxu2 %v3073_v50  ;;  %v3104_v50 = vld [vmem:[%s3892_s1 + $0x488] sm:$0xff] }
  0x79   :  { %1976 = vmatpush.bf16.msrb.mxu3 %v3081_v57  ;;  %v1697_v57 = vsel %vm1695_vm1, %v1696_v52, 0 }
  0x7a   :  { %1923 = vmatpush.bf16.msrb.mxu0 %v3056_v60  ;;  %v3095_v60 = vld [vmem:[%s3892_s1 + $0x440] sm:$0xff] }
  0x7b   :  { %1941 = vmatpush.bf16.msrb.mxu1 %v3064_v59  ;;  %v3087_v59 = vld [vmem:[%s3892_s1 + $0x400] sm:$0xff] }
  0x7c   :  { %1959 = vmatpush.bf16.msrb.mxu2 %v3072_v58  ;;  %v3103_v58 = vld [vmem:[%s3892_s1 + $0x480] sm:$0xff] }
  0x7d   :  { %1977 = vmatpush.bf16.msrb.mxu3 %v3080_v61  ;;  %v3111_v61 = vld [vmem:[%s3892_s1 + $0x4c0] sm:$0xff] }
  0x7e   :  { %1924 = vmatpush.bf16.msrb.mxu0 %v3055_v2  ;;  %v2955_v2 = vld [vmem:[%s3893_s0 + $0x98] sm:$0xf0] }
  0x7f   :  { %1942 = vmatpush.bf16.msrb.mxu1 %v3063_v63  ;;  %v3126_v63 = vld [vmem:[%s3892_s1 + $0x538] sm:$0xff] }
  0x80   :  { %1960 = vmatpush.bf16.msrb.mxu2 %v3071_v62  ;;  %v1699_v62 = vand.u32 %v1697_v57, %v1506_v56  ;;  %v3119_v56 = vld [vmem:[%s3892_s1 + $0x500] sm:$0xff] }
  0x81   :  { %1978 = vmatpush.bf16.msrb.mxu3 %v3079_v3  ;;  %1925 = vmatmul.bf16.vlgmr.msrb.gmra.mxu0 %v2173_v17  ;;  %v3138_v3 = vld [vmem:[%s3892_s1 + $0x598] sm:$0xff]  ;;  %v3127_v57 = vld [vmem:[%s3892_s1 + $0x540] sm:$0xff] }
  0x82   :  { %1989 = vmatpush.bf16.msra.mxu0 %v3094_v4  ;;  %1943 = vmatmul.bf16.vlgmr.msrb.gmra.mxu1 %v2177_v19  ;;  %v2944_v4 = vld [vmem:[%s3893_s0 + $0x44] sm:$0xf] }
  0x83   :  { %2007 = vmatpush.bf16.msra.mxu1 %v3102_v1  ;;  %1961 = vmatmul.bf16.vlgmr.msrb.gmra.mxu2 %v2181_v20  ;;  %v2188_v1 = vld [vmem:[%s3893_s0 + $0x40] sm:$0xf]  ;;  %v3124_v20 = vld [vmem:[%s3892_s1 + $0x528] sm:$0xff] }
  0x84   :  { %2025 = vmatpush.bf16.msra.mxu2 %v3110_v0  ;;  %1979 = vmatmul.bf16.vlgmr.msrb.gmra.mxu3 %v2185_v21  ;;  %v3134_v0 = vld [vmem:[%s3892_s1 + $0x578] sm:$0xff]  ;;  %v2189_v12 = vor.u32 %v2955_v2, %v2188_v1  ;;  %v3132_v21 = vld [vmem:[%s3892_s1 + $0x568] sm:$0xff]  ;;  %v2204_v1 = vld [vmem:[%s3893_s0 + $0x50] sm:$0xf] }
  0x85   :  { %2043 = vmatpush.bf16.msra.mxu3 %v3118_v6  ;;  %v3125_v6 = vld [vmem:[%s3892_s1 + $0x530] sm:$0xff]  ;;  %v2957_v2 = vld [vmem:[%s3893_s0 + $0xa8] sm:$0xf0] }
  0x86   :  { %1990 = vmatpush.bf16.msra.mxu0 %v3093_v16  ;;  %v2193_v16 = vor.u32 %v2944_v4, %v2190_v5  ;;  %v2206_v5 = vld [vmem:[%s3893_s0 + $0xac] sm:$0xf0] }
  0x87   :  { %2008 = vmatpush.bf16.msra.mxu1 %v3101_v10  ;;  %v2945_v10 = vld [vmem:[%s3893_s0 + $0x4c] sm:$0xf] }
  0x88   :  { %2026 = vmatpush.bf16.msra.mxu2 %v3109_v7  ;;  %v2196_v7 = vld [vmem:[%s3893_s0 + $0x48] sm:$0xf]  ;;  %v2201_v19 = vor.u32 %v2945_v10, %v2198_v11  ;;  %v2205_v10 = vor.u32 %v2957_v2, %v2204_v1 }
  0x89   :  { %2044 = vmatpush.bf16.msra.mxu3 %v3117_v18  ;;  %v2197_v17 = vor.u32 %v2956_v8, %v2196_v7  ;;  %v2958_v7 = vld [vmem:[%s3893_s0 + $0xb0] sm:$0xf0] }
  0x8a   :  { %1991 = vmatpush.bf16.msra.mxu0 %v3092_v23  ;;  %v3123_v23 = vld [vmem:[%s3892_s1 + $0x520] sm:$0xff] }
  0x8b   :  { %2009 = vmatpush.bf16.msra.mxu1 %v3100_v24  ;;  %v3131_v24 = vld [vmem:[%s3892_s1 + $0x560] sm:$0xff] }
  0x8c   :  { %2027 = vmatpush.bf16.msra.mxu2 %v3108_v22  ;;  %v3136_v22 = vld [vmem:[%s3892_s1 + $0x588] sm:$0xff] }
  0x8d   :  { %2045 = vmatpush.bf16.msra.mxu3 %v3116_v25 }
  0x8e   :  { %1992 = vmatpush.bf16.msra.mxu0 %v3091_v27  ;;  %v3135_v27 = vld [vmem:[%s3892_s1 + $0x580] sm:$0xff] }
  0x8f   :  { %2010 = vmatpush.bf16.msra.mxu1 %v3099_v28 }
  0x90   :  { %2028 = vmatpush.bf16.msra.mxu2 %v3107_v26 }
  0x91   :  { %2046 = vmatpush.bf16.msra.mxu3 %v3115_v29  ;;  %1930 = vmatmul.bf16.gmra.mxu0 %v549_v44 }
  0x92   :  { %1993 = vmatpush.bf16.msra.mxu0 %v3090_v33  ;;  %1948 = vmatmul.bf16.gmra.mxu1 %v550_v47  ;;  %v45_v33 = vld [vmem:[%s3893_s0 + $0x100] sm:$0xff] }
  0x93   :  { %2011 = vmatpush.bf16.msra.mxu1 %v3098_v34  ;;  %1966 = vmatmul.bf16.gmra.mxu2 %v551_v48  ;;  %v3122_v34 = vld [vmem:[%s3892_s1 + $0x518] sm:$0xff]  ;;  %v509_v39 = vunpack.c.l.b16 %v45_v33  ;;  %v510_v40 = vunpack.c.h.b16 %v45_v33 }
  0x94   :  { %2029 = vmatpush.bf16.msra.mxu2 %v3106_v32  ;;  %1984 = vmatmul.bf16.gmra.mxu3 %v552_v49  ;;  %v554_v49 = vpack.c.b16 %v508_v38, %v508_v38 }
  0x95   :  { %2047 = vmatpush.bf16.msra.mxu3 %v3114_v36  ;;  %v3130_v36 = vld [vmem:[%s3892_s1 + $0x558] sm:$0xff]  ;;  %v556_v52 = vpack.c.b16 %v510_v40, %v510_v40 }
  0x96   :  { %1994 = vmatpush.bf16.msra.mxu0 %v3089_v42  ;;  %v3129_v42 = vld [vmem:[%s3892_s1 + $0x550] sm:$0xff] }
  0x97   :  { %2012 = vmatpush.bf16.msra.mxu1 %v3097_v43 }
  0x98   :  { %2030 = vmatpush.bf16.msra.mxu2 %v3105_v41  ;;  %v3121_v41 = vld [vmem:[%s3892_s1 + $0x510] sm:$0xff] }
  0x99   :  { %2048 = vmatpush.bf16.msra.mxu3 %v3113_v45  ;;  %v553_v45 = vpack.c.b16 %v507_v37, %v507_v37 }
  0x9a   :  { %1995 = vmatpush.bf16.msra.mxu0 %v3088_v53  ;;  %v3120_v53 = vld [vmem:[%s3892_s1 + $0x508] sm:$0xff] }
  0x9b   :  { %2013 = vmatpush.bf16.msra.mxu1 %v3096_v54 }
  0x9c   :  { %2031 = vmatpush.bf16.msra.mxu2 %v3104_v50  ;;  %v555_v50 = vpack.c.b16 %v509_v39, %v509_v39 }
  0x9d   :  { %2049 = vmatpush.bf16.msra.mxu3 %v3112_v55  ;;  %v3128_v55 = vld [vmem:[%s3892_s1 + $0x548] sm:$0xff] }
  0x9e   :  { %1996 = vmatpush.bf16.msra.mxu0 %v3087_v59  ;;  %v1710_v14 = vpop.f32.mrf.mxu0 }
  0x9f   :  { %2014 = vmatpush.bf16.msra.mxu1 %v3095_v60  ;;  %v1728_v15 = vpop.f32.mrf.mxu1 }
  0xa0   :  { %2032 = vmatpush.bf16.msra.mxu2 %v3103_v58  ;;  %v1729_v18 = vadd.f32 %v1728_v15, %v1710_v14 }
  0xa1   :  { %2050 = vmatpush.bf16.msra.mxu3 %v3111_v61  ;;  %1997 = vmatmul.bf16.vlgmr.msra.gmra.mxu0 %v2189_v12 }
  0xa2   :  { %2061 = vmatpush.bf16.msrb.mxu0 %v3126_v63  ;;  %2015 = vmatmul.bf16.vlgmr.msra.gmra.mxu1 %v2193_v16 }
  0xa3   :  { %2079 = vmatpush.bf16.msrb.mxu1 %v3134_v0  ;;  %2033 = vmatmul.bf16.vlgmr.msra.gmra.mxu2 %v2197_v17  ;;  %v46_v0 = vld [vmem:[%s3893_s0 + $0x108] sm:$0xff] }
  0xa4   :  { %2100 = vmatpush.bf16.msrb.mxu2 %v1699_v62  ;;  %2051 = vmatmul.bf16.vlgmr.msra.gmra.mxu3 %v2201_v19  ;;  %v511_v4 = vunpack.c.l.b16 %v46_v0 }
  0xa5   :  { %3139 = vmatpush.bf16.msrb.mxu3 %v3126_v63 }
  0xa6   :  { %2062 = vmatpush.bf16.msrb.mxu0 %v3125_v6  ;;  %v1746_v25 = vpop.f32.mrf.mxu2  ;;  %v1712_v29 = vpop.f32.mrf.mxu0  ;;  %v557_v16 = vpack.c.b16 %v511_v4, %v511_v4 }
  0xa7   :  { %2080 = vmatpush.bf16.msrb.mxu1 %v3133_v9  ;;  %v1764_v26 = vpop.f32.mrf.mxu3  ;;  %v1747_v28 = vadd.f32 %v1746_v25, %v1729_v18  ;;  %v1730_v30 = vpop.f32.mrf.mxu1 }
  0xa8   :  { %2101 = vmatpush.bf16.msrb.mxu2 %v3138_v3  ;;  %v1731_v32 = vadd.f32 %v1730_v30, %v1712_v29  ;;  %v2946_v3 = vld [vmem:[%s3893_s0 + $0x54] sm:$0xf] }
  0xa9   :  { %3140 = vmatpush.bf16.msrb.mxu3 %v3125_v6  ;;  %v1765_v35 = vadd.f32 %v1764_v26, %v1747_v28  ;;  %v2212_v6 = vld [vmem:[%s3893_s0 + $0x58] sm:$0xf]  ;;  %v2209_v12 = vor.u32 %v2946_v3, %v2206_v5 }
  0xaa   :  { %2063 = vmatpush.bf16.msrb.mxu0 %v3124_v20 }
  0xab   :  { %2081 = vmatpush.bf16.msrb.mxu1 %v3132_v21 }
  0xac   :  { %2102 = vmatpush.bf16.msrb.mxu2 %v3137_v13  ;;  %v2213_v13 = vor.u32 %v2958_v7, %v2212_v6 }
  0xad   :  { %3141 = vmatpush.bf16.msrb.mxu3 %v3124_v20 }
  0xae   :  { %2064 = vmatpush.bf16.msrb.mxu0 %v3123_v23  ;;  %v1748_v43 = vpop.f32.mrf.mxu2  ;;  %v1715_v47 = vpop.f32.mrf.mxu0 }
  0xaf   :  { %2082 = vmatpush.bf16.msrb.mxu1 %v3131_v24  ;;  %v1766_v44 = vpop.f32.mrf.mxu3  ;;  %v1749_v46 = vadd.f32 %v1748_v43, %v1731_v32  ;;  %v1733_v48 = vpop.f32.mrf.mxu1  ;;  %v47_v24 = vld [vmem:[%s3893_s0 + $0x110] sm:$0xf] }
  0xb0   :  { %2103 = vmatpush.bf16.msrb.mxu2 %v3136_v22  ;;  %v1734_v51 = vadd.f32 %v1733_v48, %v1715_v47  ;;  %v513_v28 = vunpack.c.l.b16 %v47_v24 }
  0xb1   :  { %3142 = vmatpush.bf16.msrb.mxu3 %v3123_v23  ;;  %v1767_v54 = vadd.f32 %v1766_v44, %v1749_v46  ;;  %2002 = vmatmul.bf16.gmra.mxu0 %v553_v45 }
  0xb2   :  { %2065 = vmatpush.bf16.msrb.mxu0 %v3122_v34  ;;  %2020 = vmatmul.bf16.gmra.mxu1 %v554_v49 }
  0xb3   :  { %2083 = vmatpush.bf16.msrb.mxu1 %v3130_v36  ;;  %2038 = vmatmul.bf16.gmra.mxu2 %v555_v50 }
  0xb4   :  { %2104 = vmatpush.bf16.msrb.mxu2 %v3135_v27  ;;  %2056 = vmatmul.bf16.gmra.mxu3 %v556_v52  ;;  %v512_v27 = vunpack.c.h.b16 %v46_v0 }
  0xb5   :  { %3143 = vmatpush.bf16.msrb.mxu3 %v3122_v34  ;;  %v559_v34 = vpack.c.b16 %v513_v28, %v513_v28 }
  0xb6   :  { %2066 = vmatpush.bf16.msrb.mxu0 %v3121_v41  ;;  %v1751_v58 = vpop.f32.mrf.mxu2  ;;  %v1717_v61 = vpop.f32.mrf.mxu0  ;;  %v558_v33 = vpack.c.b16 %v512_v27, %v512_v27 }
  0xb7   :  { %2084 = vmatpush.bf16.msrb.mxu1 %v3129_v42  ;;  %v1769_v59 = vpop.f32.mrf.mxu3  ;;  %v1752_v60 = vadd.f32 %v1751_v58, %v1734_v51  ;;  %v1735_v62 = vpop.f32.mrf.mxu1 }
  0xb9   :  { %3144 = vmatpush.bf16.msrb.mxu3 %v3121_v41  ;;  %v1770_v63 = vadd.f32 %v1769_v59, %v1752_v60 }
  0xba   :  { %2067 = vmatpush.bf16.msrb.mxu0 %v3120_v53 }
  0xbb   :  { %2085 = vmatpush.bf16.msrb.mxu1 %v3128_v55 }
  0xbd   :  { %3145 = vmatpush.bf16.msrb.mxu3 %v3120_v53 }
  0xbe   :  { %2068 = vmatpush.bf16.msrb.mxu0 %v3119_v56  ;;  %v1753_v8 = vpop.f32.mrf.mxu2  ;;  %v1782_v11 = vpop.f32.mrf.mxu0 }
  0xbf   :  { %2086 = vmatpush.bf16.msrb.mxu1 %v3127_v57  ;;  %v1771_v9 = vpop.f32.mrf.mxu3  ;;  %v1783_v14 = vadd.f32 %v1782_v11, %v1765_v35  ;;  %v1800_v15 = vpop.f32.mrf.mxu1 }
  0xc1   :  { %3146 = vmatpush.bf16.msrb.mxu3 %v3119_v56  ;;  %v1801_v17 = vadd.f32 %v1800_v15, %v1783_v14  ;;  %2069 = vmatmul.bf16.vlgmr.msrb.gmra.mxu0 %v2205_v10 }
  0xc2   :  { %2087 = vmatmul.bf16.vlgmr.msrb.gmra.mxu1 %v2209_v12 }
  0xc3   :  { %2934 = vmatmul.msk.bf16.vlgmr.msrb.gmra.mxu2 %vm1687_vm2, %v2213_v13 }
  0xc4   :  { %2074 = vmatmul.bf16.vlgmr.msrb.gmra.mxu3 %v557_v16 }
  0xc6   :  { %v1818_v18 = vpop.f32.mrf.mxu2  ;;  %v1784_v21 = vpop.f32.mrf.mxu0 }
  0xc7   :  { %v1819_v19 = vadd.f32 %v1818_v18, %v1801_v17  ;;  %v1836_v20 = vpop.f32.mrf.mxu3  ;;  %v1785_v22 = vadd.f32 %v1784_v21, %v1767_v54  ;;  %v1802_v23 = vpop.f32.mrf.mxu1 }
  0xc9   :  { %v1837_v25 = vadd.f32 %v1836_v20, %v1819_v19  ;;  %v1803_v26 = vadd.f32 %v1802_v23, %v1785_v22 }
  0xce   :  { %v1820_v29 = vpop.f32.mrf.mxu2  ;;  %v1787_v32 = vpop.f32.mrf.mxu0 }
  0xcf   :  { %v1821_v30 = vadd.f32 %v1820_v29, %v1803_v26  ;;  %v1838_v31 = vpop.f32.mrf.mxu3  ;;  %v1788_v35 = vadd.f32 %v1787_v32, %v1770_v63  ;;  %v1805_v36 = vpop.f32.mrf.mxu1 }
  0xd1   :  { %v1839_v37 = vadd.f32 %v1838_v31, %v1821_v30  ;;  %v1806_v38 = vadd.f32 %v1805_v36, %v1788_v35 }
  0xd2   :  { %2092 = vmatmul.bf16.gmra.mxu1 %v558_v33 }
  0xd3   :  { %2935 = vmatmul.msk.bf16.gmra.mxu2 %vm1687_vm2, %v559_v34 }
  0xd6   :  { %v1823_v39 = vpop.f32.mrf.mxu2  ;;  %v1789_v42 = vpop.f32.mrf.mxu0 }
  0xd7   :  { %v1824_v40 = vadd.f32 %v1823_v39, %v1806_v38  ;;  %v1841_v41 = vpop.f32.mrf.mxu3  ;;  %v1807_v43 = vpop.f32.mrf.mxu1 }
  0xd9   :  { %v1842_v44 = vadd.f32 %v1841_v41, %v1824_v40 }
  0xde   :  { %v1825_v45 = vpop.f32.mrf.mxu2  ;;  %v1854_v47 = vpop.f32.mrf.mxu0 }
  0xdf   :  { %v1843_v46 = vpop.f32.mrf.mxu3  ;;  %v1855_v48 = vadd.f32 %v1854_v47, %v1837_v25  ;;  %v1872_v49 = vpop.f32.mrf.mxu1 }
  0xe1   :  { %v1873_v50 = vadd.f32 %v1872_v49, %v1855_v48 }
  0xe6   :  { %v1890_v51 = vpop.f32.mrf.mxu2  ;;  %v1856_v54 = vpop.f32.mrf.mxu0 }
  0xe7   :  { %v1891_v52 = vadd.f32 %v1890_v51, %v1873_v50  ;;  %v1908_v53 = vpop.f32.mrf.mxu3  ;;  %v1857_v55 = vadd.f32 %v1856_v54, %v1839_v37  ;;  %v1874_v56 = vpop.f32.mrf.mxu1 }
  0xe9   :  { %v1909_v57 = vadd.f32 %v1908_v53, %v1891_v52  ;;  %v1875_v58 = vadd.f32 %v1874_v56, %v1857_v55 }
  0xee   :  { %v1892_v59 = vpop.f32.mrf.mxu2  ;;  %v1859_v62 = vpop.f32.mrf.mxu0 }
  0xef   :  { %v1893_v60 = vadd.f32 %v1892_v59, %v1875_v58  ;;  %v1910_v61 = vpop.f32.mrf.mxu3  ;;  %v1860_v63 = vadd.f32 %v1859_v62, %v1842_v44  ;;  %v1877_v0 = vpop.f32.mrf.mxu1 }
  0xf1   :  { %v1911_v1 = vadd.f32 %v1910_v61, %v1893_v60  ;;  %v1878_v2 = vadd.f32 %v1877_v0, %v1860_v63 }
  0xf6   :  { %v1895_v3 = vpop.f32.mrf.mxu2  ;;  %v1861_v6 = vpop.f32.mrf.mxu0 }
  0xf7   :  { %v1896_v4 = vadd.f32 %v1895_v3, %v1878_v2  ;;  %v1913_v5 = vpop.f32.mrf.mxu3  ;;  %v1879_v7 = vpop.f32.mrf.mxu1 }
  0xf9   :  { %v1914_v8 = vadd.f32 %v1913_v5, %v1896_v4 }
  0xfe   :  { %v1897_v9 = vpop.f32.mrf.mxu2  ;;  %v1926_v11 = vpop.f32.mrf.mxu0 }
  0xff   :  { %v1915_v10 = vpop.f32.mrf.mxu3  ;;  %v1944_v12 = vpop.f32.mrf.mxu1  ;;  %v1927_v33 = vadd.f32 %v1926_v11, %v1909_v57 }
 0x101   :  { %v1945_v34 = vadd.f32 %v1944_v12, %v1927_v33 }
 0x106   :  { %v1962_v13 = vpop.f32.mrf.mxu2  ;;  %v1928_v15 = vpop.f32.mrf.mxu0 }
 0x107   :  { %v1980_v14 = vpop.f32.mrf.mxu3  ;;  %v1946_v16 = vpop.f32.mrf.mxu1  ;;  %v1963_v36 = vadd.f32 %v1962_v13, %v1945_v34  ;;  %v1929_v40 = vadd.f32 %v1928_v15, %v1911_v1 }
 0x109   :  { %v1981_v41 = vadd.f32 %v1980_v14, %v1963_v36  ;;  %v1947_v42 = vadd.f32 %v1946_v16, %v1929_v40 }
 0x10e   :  { %v1964_v17 = vpop.f32.mrf.mxu2  ;;  %v1931_v19 = vpop.f32.mrf.mxu0 }
 0x10f   :  { %v1982_v18 = vpop.f32.mrf.mxu3  ;;  %v1949_v20 = vpop.f32.mrf.mxu1  ;;  %v1965_v45 = vadd.f32 %v1964_v17, %v1947_v42  ;;  %v1932_v51 = vadd.f32 %v1931_v19, %v1914_v8 }
 0x111   :  { %v1983_v50 = vadd.f32 %v1982_v18, %v1965_v45  ;;  %v1950_v55 = vadd.f32 %v1949_v20, %v1932_v51 }
 0x116   :  { %v1967_v21 = vpop.f32.mrf.mxu2  ;;  %v1933_v23 = vpop.f32.mrf.mxu0 }
 0x117   :  { %v1985_v22 = vpop.f32.mrf.mxu3  ;;  %v1951_v24 = vpop.f32.mrf.mxu1  ;;  %v1968_v60 = vadd.f32 %v1967_v21, %v1950_v55 }
 0x119   :  { %v1986_v0 = vadd.f32 %v1985_v22, %v1968_v60 }
 0x11e   :  { %v1969_v25 = vpop.f32.mrf.mxu2  ;;  %v1998_v27 = vpop.f32.mrf.mxu0 }
 0x11f   :  { %v1987_v26 = vpop.f32.mrf.mxu3  ;;  %v2016_v28 = vpop.f32.mrf.mxu1  ;;  %v1999_v43 = vadd.f32 %v1998_v27, %v1981_v41 }
 0x121   :  { %v2017_v49 = vadd.f32 %v2016_v28, %v1999_v43 }
 0x126   :  { %v2034_v29 = vpop.f32.mrf.mxu2  ;;  %v2000_v31 = vpop.f32.mrf.mxu0 }
 0x127   :  { %v2052_v30 = vpop.f32.mrf.mxu3  ;;  %v2018_v32 = vpop.f32.mrf.mxu1  ;;  %v2035_v52 = vadd.f32 %v2034_v29, %v2017_v49  ;;  %v2001_v53 = vadd.f32 %v2000_v31, %v1983_v50 }
 0x129   :  { %v2053_v56 = vadd.f32 %v2052_v30, %v2035_v52  ;;  %v2019_v61 = vadd.f32 %v2018_v32, %v2001_v53 }
 0x12e   :  { %v2036_v35 = vpop.f32.mrf.mxu2  ;;  %v2003_v38 = vpop.f32.mrf.mxu0 }
 0x12f   :  { %v2054_v37 = vpop.f32.mrf.mxu3  ;;  %v2021_v39 = vpop.f32.mrf.mxu1  ;;  %v2037_v63 = vadd.f32 %v2036_v35, %v2019_v61  ;;  %v2004_v4 = vadd.f32 %v2003_v38, %v1986_v0 }
 0x131   :  { %v2055_v3 = vadd.f32 %v2054_v37, %v2037_v63  ;;  %v2022_v10 = vadd.f32 %v2021_v39, %v2004_v4 }
 0x136   :  { %v2039_v44 = vpop.f32.mrf.mxu2  ;;  %v2005_v47 = vpop.f32.mrf.mxu0 }
 0x137   :  { %v2057_v46 = vpop.f32.mrf.mxu3  ;;  %v2023_v48 = vpop.f32.mrf.mxu1  ;;  %v2040_v11 = vadd.f32 %v2039_v44, %v2022_v10 }
 0x139   :  { %v2058_v17 = vadd.f32 %v2057_v46, %v2040_v11 }
 0x13e   :  { %v2041_v54 = vpop.f32.mrf.mxu2  ;;  %v2070_v58 = vpop.f32.mrf.mxu0 }
 0x13f   :  { %v2059_v57 = vpop.f32.mrf.mxu3  ;;  %v2088_v59 = vpop.f32.mrf.mxu1  ;;  %v2071_v62 = vadd.f32 %v2070_v58, %v2053_v56 }
 0x141   :  { %v2089_v1 = vadd.f32 %v2088_v59, %v2071_v62 }
 0x146   :  { %v2106_v2 = vpop.f32.mrf.mxu2  ;;  %v2072_v7 = vpop.f32.mrf.mxu0 }
 0x147   :  { %v2075_v5 = vpop.f32.mrf.mxu3  ;;  %v2107_v6 = vadd.f32 %v2106_v2, %v2089_v1  ;;  %v2090_v8 = vpop.f32.mrf.mxu1  ;;  %v2073_v9 = vadd.f32 %v2072_v7, %v2055_v3 }
 0x148   :  { %v2076_v18 = vadd.f32 %v2075_v5, %v2058_v17 }
 0x149   :  { %2115 = vst [vmem:[%s3894_s2] sm:$0xff] %v2107_v6  ;;  %v2091_v12 = vadd.f32 %v2090_v8, %v2073_v9 }
 0x14e   :  { %v2108_v13 = vpop.f32.mrf.mxu2 }
 0x14f   :  { %v2109_v14 = vadd.f32 %v2108_v13, %v2091_v12  ;;  %v2077_v15 = vpop.f32.mrf.mxu3  ;;  %v2093_v16 = vpop.f32.mrf.mxu1 }
 0x150   :  { %v2094_v19 = vadd.f32 %v2093_v16, %v2076_v18 }
 0x151   :  { %2116 = vst [vmem:[%s3894_s2 + $0x8] sm:$0xff] %v2109_v14 }
 0x156   :  { %v2111_v20 = vpop.f32.mrf.mxu2 }
 0x157   :  { %v2112_v21 = vadd.f32 %v2111_v20, %v2094_v19  ;;  %v2095_v22 = vpop.f32.mrf.mxu1 }
 0x159   :  { %2117 = vst [vmem:[%s3894_s2 + $0x10] sm:$0xff] %v2112_v21 }
 0x15e   :  { %v2113_v23 = vpop.f32.mrf.mxu2 }

</bundles_post_ra>
